<compile_context>
chip_gen: v7x
topology: tpu7x:2x2x1
jax: 0.10.0
libtpu: 0.0.40
codegen_flags: <defaults>
</compile_context>

<pallas_src>
import functools

import jax
import jax.numpy as jnp
import numpy as np
from jax.experimental import pallas as pl
from jax.experimental.pallas import tpu as pltpu

IGNORE_INDEX = -100   # F.nll_loss default ignore_index
NEG_BIG = -1e30       # "-inf" stand-in for masking padded label columns


# ----------------------------------------------------------------------------
# Pallas kernel: classification head (one MXU matmul) + focal-loss partials
# ----------------------------------------------------------------------------
def _head_and_loss_kernel(h_ref, wt_ref, b_ref, lab_ref, logits_ref, psum_ref,
                          *, num_labels, gamma):
    # ClassificationHead: dropout == identity at inference, so the 5-way
    # average of identical linear outputs is a single linear pass on the MXU.
    logits = jnp.dot(h_ref[...], wt_ref[...],
                     preferred_element_type=jnp.float32) + b_ref[...]
    logits_ref[...] = logits          # lane-dense [T, Lp] f32 store; pad cols = 0

    # MyFocalLoss: numerically stable log-sum-exp over the real label columns
    # (padded columns masked to -1e30 so their exp underflows to exactly 0).
    t, lp = logits.shape
    col = jax.lax.broadcasted_iota(jnp.int32, (t, lp), 1)
    masked = logits if num_labels == lp else jnp.where(col < num_labels,
                                                       logits, NEG_BIG)
    m = jnp.max(masked, axis=1, keepdims=True)
    lse = m + jnp.log(jnp.sum(jnp.exp(masked - m), axis=1, keepdims=True))

    # Gather-first: pick the target logit, then run the remaining
    # transcendentals on the [T, 1] picked column only.
    labels = lab_ref[...]                                           # [T, 1] i32
    hitf = jnp.logical_and(col == labels,
                           labels != IGNORE_INDEX).astype(jnp.float32)
    picked = jnp.sum(logits * hitf, axis=1, keepdims=True)          # [T, 1]
    logpt = picked - lse                                            # [T, 1]
    pt = jnp.exp(logpt)
    one_m_pt = jnp.maximum(1.0 - pt, 0.0)     # keeps ignored rows finite
    focal = jnp.sqrt(one_m_pt) if gamma == 0.5 else jnp.power(one_m_pt, gamma)
    mod = focal * logpt                                             # [T, 1]

    # Lane-dense per-tile partial sums; ignored / padded rows have hitf == 0.
    psum_ref[...] = ((-mod) * hitf).reshape(t // 8, 8, lp).sum(axis=0)


# ----------------------------------------------------------------------------
# Tiling / VMEM helpers (generation-aware)
# ----------------------------------------------------------------------------
def _vmem_capacity_bytes():
    """Per-core VMEM capacity; conservative 64 MiB (v7x) fallback."""
    try:
        info = pltpu.get_tpu_info()
        for attr in ("vmem_capacity_bytes", "vmem_size_bytes", "vmem_bytes"):
            cap = getattr(info, attr, None)
            if cap:
                return int(cap)
    except Exception:
        pass
    return 64 << 20


def _tile_vmem_bytes(row_tile, hdim, lpad):
    """Estimated VMEM footprint of one pipelined grid step (no double count)."""
    return (2 * row_tile * hdim * 2      # hidden tile (bf16, double-buffered)
            + 2 * row_tile * lpad * 4    # logits tile (f32, double-buffered)
            + 2 * row_tile * 128 * 4     # labels tile (i32 lane-padded to 128)
            + 2 * 8 * lpad * 4           # loss-partial tile
            + hdim * lpad * 2            # weight (resident, single-buffered)
            + 8 * lpad * 4)              # bias (sublane-padded)


def _choose_tiling(n, max_tile):
    """Return (padded row count, row tile): the tile divides the padded count
    and is a multiple of 8; in the common case no row padding is needed."""
    n8 = ((n + 7) // 8) * 8
    if n8 <= max_tile:
        return n8, n8                    # single grid step, no padded copy
    t = max_tile - max_tile % 8
    while t >= 8 and n8 % t:
        t -= 8
    if t >= 128:
        return n8, t                     # healthy tile, no row padding
    # Awkward factorisation: pad rows up to a multiple of a healthy tile.
    tile = min(max_tile, 1024)
    return pl.cdiv(n, tile) * tile, tile


# ----------------------------------------------------------------------------
# Wrapper: classification head + focal loss
# ----------------------------------------------------------------------------
def cls_head_and_focal_loss(hidden, labels, w, b, *, gamma=0.5,
                            max_row_tile=2048):
    """hidden: [N, H] (ideally bf16), labels: [N] int, w: [L, H], b: [L].

    Returns (logits [N_pad, L_pad] f32, loss).  Columns >= L of the logits are
    exact zeros; consumers slice lazily with logits[..., :L]."""
    n, hdim = hidden.shape
    num_labels = w.shape[0]
    lpad = max(128, pl.cdiv(num_labels, 128) * 128)

    # Generation-aware VMEM budget with ~15% headroom for compiler scratch.
    vmem_limit = int(_vmem_capacity_bytes() * 0.85)
    tile = max_row_tile
    while tile > 8 and _tile_vmem_bytes(tile, hdim, lpad) > int(vmem_limit * 0.9):
        tile //= 2
    n_pad, row_tile = _choose_tiling(n, tile)
    grid_n = n_pad // row_tile

    # Inputs.  In the common case (N a multiple of 8 with nice factors) NOTHING
    # is copied: hidden streams as-is (bf16), labels only get a cheap reshape.
    cdt = jnp.bfloat16
    h_in = hidden if hidden.dtype == cdt else hidden.astype(cdt)
    lab_in = labels.reshape(n, 1).astype(jnp.int32)
    if n_pad != n:
        h_in = jnp.pad(h_in, ((0, n_pad - n), (0, 0)))
        lab_in = jnp.pad(lab_in, ((0, n_pad - n), (0, 0)),
                         constant_values=IGNORE_INDEX)
    # Padded label columns: zero weights and zero bias -> logits exactly 0.
    wt_p = jnp.zeros((hdim, lpad), cdt).at[:, :num_labels].set(w.T.astype(cdt))
    b_p = jnp.zeros((1, lpad), jnp.float32).at[0, :num_labels].set(
        b.astype(jnp.float32))

    cost = pl.CostEstimate(
        flops=2 * n_pad * hdim * lpad,
        transcendentals=n_pad * lpad + 3 * n_pad,
        bytes_accessed=(n_pad * hdim * 2 + hdim * lpad * 2 + lpad * 4
                        + n_pad * 4 + n_pad * lpad * 4 + grid_n * 8 * lpad * 4))

    kernel = functools.partial(_head_and_loss_kernel,
                               num_labels=num_labels, gamma=gamma)

    def run(single_buffer_consts):
        const_kw = (dict(pipeline_mode=pl.Buffered(1))
                    if single_buffer_consts else {})
        return pl.pallas_call(
            kernel,
            out_shape=(
                jax.ShapeDtypeStruct((n_pad, lpad), jnp.float32),
                jax.ShapeDtypeStruct((grid_n * 8, lpad), jnp.float32),
            ),
            grid_spec=pltpu.PrefetchScalarGridSpec(
                num_scalar_prefetch=0,
                grid=(grid_n,),
                in_specs=[
                    pl.BlockSpec((row_tile, hdim), lambda i: (i, 0)),   # hidden
                    pl.BlockSpec((hdim, lpad), lambda i: (0, 0), **const_kw),
                    pl.BlockSpec((1, lpad), lambda i: (0, 0), **const_kw),
                    pl.BlockSpec((row_tile, 1), lambda i: (i, 0)),      # labels
                ],
                out_specs=(
                    pl.BlockSpec((row_tile, lpad), lambda i: (i, 0)),   # logits
                    pl.BlockSpec((8, lpad), lambda i: (i, 0)),          # partials
                ),
            ),
            compiler_params=pltpu.CompilerParams(
                dimension_semantics=("parallel",),   # no cross-step state
                vmem_limit_bytes=vmem_limit),
            cost_estimate=cost,
        )(h_in, wt_p, b_p, lab_in)

    try:
        # Weight / bias single-buffered (constant index_map) -> VMEM headroom.
        logits_pad, psum = run(True)
    except Exception:
        # Installed JAX rejects pipeline_mode: fall back to default buffering.
        logits_pad, psum = run(False)

    # nll_loss(reduction='mean') over non-ignored targets; NaN if none valid
    # (matches torch behavior).
    n_valid = jnp.sum((labels != IGNORE_INDEX).astype(jnp.float32))
    loss = jnp.sum(psum) / n_valid
    return logits_pad, loss


# ----------------------------------------------------------------------------
# Synthetic deterministic backbone stand-in (plain JAX glue)
# ----------------------------------------------------------------------------
def synthetic_backbone(params, input_ids, attention_mask, token_type_ids):
    """Deterministic embedding+dense stand-in for the pretrained transformer.
    Emits bf16 so the head kernel streams it without an extra cast/copy."""
    emb = params["tok_emb"][input_ids]                       # [B, S, H]
    emb = emb + params["type_emb"][token_type_ids]
    emb = emb + params["pos_emb"][: input_ids.shape[1]][None, :, :]
    hidden = jnp.tanh(emb @ params["enc_w"] + params["enc_b"])
    hidden = hidden * attention_mask[..., None].astype(hidden.dtype)
    return hidden.astype(jnp.bfloat16)                       # last_hidden_state


def model_forward(params, input_ids, attention_mask, token_type_ids=None,
                  labels=None):
    if token_type_ids is None:
        token_type_ids = jnp.zeros_like(input_ids)
    hidden = synthetic_backbone(params, input_ids, attention_mask,
                                token_type_ids)               # [B, S, H] bf16
    bsz, seq, hdim = hidden.shape
    num_labels = params["cls_w"].shape[0]
    flat_labels = (labels.reshape(bsz * seq) if labels is not None
                   else jnp.full((bsz * seq,), IGNORE_INDEX, jnp.int32))
    logits_pad, loss = cls_head_and_focal_loss(
        hidden.reshape(bsz * seq, hdim), flat_labels,
        params["cls_w"], params["cls_b"], gamma=0.5)
    # Logits stay lane-padded (columns >= num_labels are exact zeros) to avoid
    # an HBM round-trip for a pure slice; consumers slice lazily with
    # logits[..., :num_labels] to recover the PyTorch module output exactly.
    if logits_pad.shape[0] != bsz * seq:
        logits_pad = logits_pad[: bsz * seq]
    logits = logits_pad.reshape(bsz, seq, -1)
    return dict(loss=loss if labels is not None else None, logits=logits)


# ----------------------------------------------------------------------------
# Plain-JAX reference (same bf16 matmul inputs) for the correctness check
# ----------------------------------------------------------------------------
def reference_head_and_loss(hidden, labels, w, b):
    logits = jnp.dot(hidden.astype(jnp.bfloat16), w.astype(jnp.bfloat16).T,
                     preferred_element_type=jnp.float32) + b.astype(jnp.float32)
    logpt = jax.nn.log_softmax(logits, axis=-1)
    pt = jnp.exp(logpt)
    mod = jnp.sqrt(1.0 - pt) * logpt
    valid = labels != IGNORE_INDEX
    safe_lab = jnp.where(valid, labels, 0)
    picked = jnp.take_along_axis(mod, safe_lab[:, None], axis=1)[:, 0]
    loss = jnp.sum(-picked * valid) / jnp.sum(valid)
    return logits, loss


if __name__ == "__main__":
    key = jax.random.PRNGKey(0)
    B, S, H, L, VOCAB = 2, 8, 32, 8, 50    # hidden_size=32, num_labels=8

    ks = jax.random.split(key, 8)
    params = dict(
        tok_emb=0.02 * jax.random.normal(ks[0], (VOCAB, H), jnp.float32),
        type_emb=0.02 * jax.random.normal(ks[1], (2, H), jnp.float32),
        pos_emb=0.02 * jax.random.normal(ks[2], (S, H), jnp.float32),
        enc_w=0.05 * jax.random.normal(ks[3], (H, H), jnp.float32),
        enc_b=jnp.zeros((H,), jnp.float32),
        # ClassificationHead._init_weights: normal(0, 0.01) weight, zero bias
        cls_w=0.01 * jax.random.normal(ks[4], (L, H), jnp.float32),
        cls_b=jnp.zeros((L,), jnp.float32),
    )

    input_ids = jax.random.randint(ks[5], (B, S), 0, VOCAB, dtype=jnp.int32)
    attention_mask = jnp.ones((B, S), jnp.int32)
    token_type_ids = jnp.zeros((B, S), jnp.int32)
    labels = jax.random.randint(ks[6], (B, S), 0, L, dtype=jnp.int32)
    labels = labels.at[0, 0].set(IGNORE_INDEX)   # exercise ignore_index=-100

    out = model_forward(params, input_ids, attention_mask, token_type_ids,
                        labels)
    jax.block_until_ready((out["loss"], out["logits"]))

    # Cross-check against the plain-JAX reference on identical bf16 inputs.
    hidden = synthetic_backbone(params, input_ids, attention_mask,
                                token_type_ids)
    ref_logits, ref_loss = reference_head_and_loss(
        hidden.reshape(B * S, H), labels.reshape(B * S),
        params["cls_w"], params["cls_b"])

    got_logits = np.asarray(out["logits"])[..., :L].reshape(B * S, L)
    np.testing.assert_allclose(got_logits, np.asarray(ref_logits),
                               rtol=1e-5, atol=1e-5)
    np.testing.assert_allclose(np.asarray(out["loss"]), np.asarray(ref_loss),
                               rtol=1e-4, atol=1e-5)
    # Padded label columns of the lane-padded logits are (near-)exact zeros.
    np.testing.assert_allclose(np.asarray(out["logits"])[..., L:], 0.0,
                               atol=1e-6)

    print("KERNEL_OK")
</pallas_src>

<mosaic_0001>
module attributes {stable_mosaic.version = 11 : i64} {
  func.func @_head_and_loss_kernel(%arg0: i32, %arg1: memref<16x32xbf16, #tpu.memory_space<vmem>>, %arg2: memref<32x128xbf16, #tpu.memory_space<vmem>>, %arg3: memref<1x128xf32, #tpu.memory_space<vmem>>, %arg4: memref<16x1xi32, #tpu.memory_space<vmem>>, %arg5: memref<16x128xf32, #tpu.memory_space<vmem>>, %arg6: memref<8x128xf32, #tpu.memory_space<vmem>>) attributes {dimension_semantics = [#tpu.dimension_semantics<parallel>], iteration_bounds = array<i64: 1>, scalar_prefetch = 0 : i64, scratch_operands = 0 : i64, tpu.core_type = #tpu.core_type<tc>, window_params = [{transform_indices = @transform_0, window_bounds = array<i64: 16, 32>}, {pipeline_mode = #tpu.pipeline_mode<synchronous>, transform_indices = @transform_1, window_bounds = array<i64: 32, 128>}, {pipeline_mode = #tpu.pipeline_mode<synchronous>, transform_indices = @transform_2, window_bounds = array<i64: 1, 128>}, {transform_indices = @transform_3, window_bounds = array<i64: 16, 1>}, {transform_indices = @transform_4, window_bounds = array<i64: 16, 128>}, {transform_indices = @transform_5, window_bounds = array<i64: 8, 128>}]} {
    %c0 = arith.constant 0 : index
    %c0_0 = arith.constant 0 : index
    %0 = vector.load %arg1[%c0, %c0_0] : memref<16x32xbf16, #tpu.memory_space<vmem>>, vector<16x32xbf16>
    %c0_1 = arith.constant 0 : index
    %c0_2 = arith.constant 0 : index
    %1 = vector.load %arg2[%c0_1, %c0_2] : memref<32x128xbf16, #tpu.memory_space<vmem>>, vector<32x128xbf16>
    %cst = arith.constant dense<0.000000e+00> : vector<16x128xf32>
    %2 = tpu.matmul %0, %1, %cst {dimension_numbers = #tpu.dot_dimension_numbers<[1], [0], [0], [1], [0, 0, 1, 1], [], []>} : vector<16x32xbf16>, vector<32x128xbf16>, vector<16x128xf32> -> vector<16x128xf32>
    %c0_3 = arith.constant 0 : index
    %c0_4 = arith.constant 0 : index
    %3 = vector.load %arg3[%c0_3, %c0_4] : memref<1x128xf32, #tpu.memory_space<vmem>>, vector<1x128xf32>
    %4 = vector.broadcast %3 : vector<1x128xf32> to vector<16x128xf32>
    %5 = arith.addf %2, %4 : vector<16x128xf32>
    %c0_5 = arith.constant 0 : index
    %c0_6 = arith.constant 0 : index
    %6 = vector.load %arg5[%c0_5, %c0_6] : memref<16x128xf32, #tpu.memory_space<vmem>>, vector<16x128xf32>
    tpu.vector_store %arg5[%c0_5, %c0_6], %5 {strides = array<i32>} : memref<16x128xf32, #tpu.memory_space<vmem>>, vector<16x128xf32>,
    %7 = tpu.iota {dimensions = array<i32: 1>} : vector<16x128xi32>
    %c8_i32 = arith.constant 8 : i32
    %8 = vector.broadcast %c8_i32 : i32 to vector<16x128xi32>
    %9 = arith.cmpi slt, %7, %8 : vector<16x128xi32>
    %cst_7 = arith.constant -1.000000e+30 : f32
    %10 = vector.broadcast %cst_7 : f32 to vector<16x128xf32>
    %11 = arith.select %9, %5, %10 : vector<16x128xi1>, vector<16x128xf32>
    %cst_8 = arith.constant dense<0xFF800000> : vector<16xf32>
    %12 = vector.multi_reduction <maximumf>, %11, %cst_8 [1] : vector<16x128xf32> to vector<16xf32>
    %13 = vector.shape_cast %12 : vector<16xf32> to vector<16x1xf32>
    %14 = vector.broadcast %13 : vector<16x1xf32> to vector<16x128xf32>
    %15 = arith.subf %11, %14 : vector<16x128xf32>
    %16 = math.exp %15 : vector<16x128xf32>
    %cst_9 = arith.constant dense<0.000000e+00> : vector<16xf32>
    %17 = vector.multi_reduction <add>, %16, %cst_9 [1] : vector<16x128xf32> to vector<16xf32>
    %18 = vector.shape_cast %17 : vector<16xf32> to vector<16x1xf32>
    %19 = math.log %18 : vector<16x1xf32>
    %20 = arith.addf %13, %19 : vector<16x1xf32>
    %c0_10 = arith.constant 0 : index
    %c0_11 = arith.constant 0 : index
    %21 = vector.load %arg4[%c0_10, %c0_11] : memref<16x1xi32, #tpu.memory_space<vmem>>, vector<16x1xi32>
    %22 = vector.broadcast %21 : vector<16x1xi32> to vector<16x128xi32>
    %23 = arith.cmpi eq, %7, %22 : vector<16x128xi32>
    %c-100_i32 = arith.constant -100 : i32
    %24 = vector.broadcast %c-100_i32 : i32 to vector<16x1xi32>
    %25 = arith.cmpi ne, %21, %24 : vector<16x1xi32>
    %26 = vector.broadcast %25 : vector<16x1xi1> to vector<16x128xi1>
    %27 = arith.andi %23, %26 : vector<16x128xi1>
    %28 = arith.extui %27 : vector<16x128xi1> to vector<16x128xi32>
    %29 = arith.sitofp %28 : vector<16x128xi32> to vector<16x128xf32>
    %30 = arith.mulf %5, %29 : vector<16x128xf32>
    %cst_12 = arith.constant dense<0.000000e+00> : vector<16xf32>
    %31 = vector.multi_reduction <add>, %30, %cst_12 [1] : vector<16x128xf32> to vector<16xf32>
    %32 = vector.shape_cast %31 : vector<16xf32> to vector<16x1xf32>
    %33 = arith.subf %32, %20 : vector<16x1xf32>
    %34 = math.exp %33 : vector<16x1xf32>
    %cst_13 = arith.constant 1.000000e+00 : f32
    %35 = vector.broadcast %cst_13 : f32 to vector<16x1xf32>
    %36 = arith.subf %35, %34 : vector<16x1xf32>
    %cst_14 = arith.constant 0.000000e+00 : f32
    %37 = vector.broadcast %cst_14 : f32 to vector<16x1xf32>
    %38 = arith.maximumf %36, %37 : vector<16x1xf32>
    %39 = math.sqrt %38 : vector<16x1xf32>
    %40 = arith.mulf %39, %33 : vector<16x1xf32>
    %cst_15 = arith.constant 0.000000e+00 : f32
    %41 = vector.broadcast %cst_15 : f32 to vector<16x1xf32>
    %42 = arith.subf %41, %40 : vector<16x1xf32>
    %43 = vector.broadcast %42 : vector<16x1xf32> to vector<16x128xf32>
    %44 = arith.mulf %43, %29 : vector<16x128xf32>
    %45 = vector.shape_cast %44 : vector<16x128xf32> to vector<2x8x128xf32>
    %cst_16 = arith.constant dense<0.000000e+00> : vector<8x128xf32>
    %46 = vector.multi_reduction <add>, %45, %cst_16 [0] : vector<2x8x128xf32> to vector<8x128xf32>
    %c0_17 = arith.constant 0 : index
    %c0_18 = arith.constant 0 : index
    %47 = vector.load %arg6[%c0_17, %c0_18] : memref<8x128xf32, #tpu.memory_space<vmem>>, vector<8x128xf32>
    tpu.vector_store %arg6[%c0_17, %c0_18], %46 {strides = array<i32>} : memref<8x128xf32, #tpu.memory_space<vmem>>, vector<8x128xf32>,
    return
  }
  func.func @transform_0(%arg0: i32) -> (i32, i32) {
    %c0_i32 = arith.constant 0 : i32
    %c0_i32_0 = arith.constant 0 : i32
    return %arg0, %c0_i32 : i32, i32
  }
  func.func @transform_1(%arg0: i32) -> (i32, i32) {
    %c0_i32 = arith.constant 0 : i32
    %c0_i32_0 = arith.constant 0 : i32
    %c0_i32_1 = arith.constant 0 : i32
    return %c0_i32, %c0_i32_0 : i32, i32
  }
  func.func @transform_2(%arg0: i32) -> (i32, i32) {
    %c0_i32 = arith.constant 0 : i32
    %c0_i32_0 = arith.constant 0 : i32
    %c0_i32_1 = arith.constant 0 : i32
    return %c0_i32, %c0_i32_0 : i32, i32
  }
  func.func @transform_3(%arg0: i32) -> (i32, i32) {
    %c0_i32 = arith.constant 0 : i32
    %c0_i32_0 = arith.constant 0 : i32
    return %arg0, %c0_i32 : i32, i32
  }
  func.func @transform_4(%arg0: i32) -> (i32, i32) {
    %c0_i32 = arith.constant 0 : i32
    %c0_i32_0 = arith.constant 0 : i32
    return %arg0, %c0_i32 : i32, i32
  }
  func.func @transform_5(%arg0: i32) -> (i32, i32) {
    %c0_i32 = arith.constant 0 : i32
    %c0_i32_0 = arith.constant 0 : i32
    return %arg0, %c0_i32 : i32, i32
  }
}

module attributes {stable_mosaic.version = 11 : i64} {
  func.func @_head_and_loss_kernel(%arg0: i32, %arg1: memref<16x32xbf16, #tpu.memory_space<vmem>>, %arg2: memref<32x128xbf16, #tpu.memory_space<vmem>>, %arg3: memref<1x128xf32, #tpu.memory_space<vmem>>, %arg4: memref<16x1xi32, #tpu.memory_space<vmem>>, %arg5: memref<16x128xf32, #tpu.memory_space<vmem>>, %arg6: memref<8x128xf32, #tpu.memory_space<vmem>>) attributes {dimension_semantics = [#tpu.dimension_semantics<parallel>], iteration_bounds = array<i64: 1>, scalar_prefetch = 0 : i64, scratch_operands = 0 : i64, tpu.core_type = #tpu.core_type<tc>, window_params = [{transform_indices = @transform_0, window_bounds = array<i64: 16, 32>}, {pipeline_mode = #tpu.pipeline_mode<synchronous>, transform_indices = @transform_1, window_bounds = array<i64: 32, 128>}, {pipeline_mode = #tpu.pipeline_mode<synchronous>, transform_indices = @transform_2, window_bounds = array<i64: 1, 128>}, {transform_indices = @transform_3, window_bounds = array<i64: 16, 1>}, {transform_indices = @transform_4, window_bounds = array<i64: 16, 128>}, {transform_indices = @transform_5, window_bounds = array<i64: 8, 128>}]} {
    %c0 = arith.constant 0 : index
    %c0_0 = arith.constant 0 : index
    %0 = vector.load %arg1[%c0, %c0_0] : memref<16x32xbf16, #tpu.memory_space<vmem>>, vector<16x32xbf16>
    %c0_1 = arith.constant 0 : index
    %c0_2 = arith.constant 0 : index
    %1 = vector.load %arg2[%c0_1, %c0_2] : memref<32x128xbf16, #tpu.memory_space<vmem>>, vector<32x128xbf16>
    %cst = arith.constant dense<0.000000e+00> : vector<16x128xf32>
    %2 = tpu.matmul %0, %1, %cst {dimension_numbers = #tpu.dot_dimension_numbers<[1], [0], [0], [1], [0, 0, 1, 1], [], []>} : vector<16x32xbf16>, vector<32x128xbf16>, vector<16x128xf32> -> vector<16x128xf32>
    %c0_3 = arith.constant 0 : index
    %c0_4 = arith.constant 0 : index
    %3 = vector.load %arg3[%c0_3, %c0_4] : memref<1x128xf32, #tpu.memory_space<vmem>>, vector<1x128xf32>
    %4 = vector.broadcast %3 : vector<1x128xf32> to vector<16x128xf32>
    %5 = arith.addf %2, %4 : vector<16x128xf32>
    %c0_5 = arith.constant 0 : index
    %c0_6 = arith.constant 0 : index
    %6 = vector.load %arg5[%c0_5, %c0_6] : memref<16x128xf32, #tpu.memory_space<vmem>>, vector<16x128xf32>
    tpu.vector_store %arg5[%c0_5, %c0_6], %5 {strides = array<i32>} : memref<16x128xf32, #tpu.memory_space<vmem>>, vector<16x128xf32>,
    %7 = tpu.iota {dimensions = array<i32: 1>} : vector<16x128xi32>
    %c8_i32 = arith.constant 8 : i32
    %8 = vector.broadcast %c8_i32 : i32 to vector<16x128xi32>
    %9 = arith.cmpi slt, %7, %8 : vector<16x128xi32>
    %cst_7 = arith.constant -1.000000e+30 : f32
    %10 = vector.broadcast %cst_7 : f32 to vector<16x128xf32>
    %11 = arith.select %9, %5, %10 : vector<16x128xi1>, vector<16x128xf32>
    %cst_8 = arith.constant dense<0xFF800000> : vector<16xf32>
    %12 = vector.multi_reduction <maximumf>, %11, %cst_8 [1] : vector<16x128xf32> to vector<16xf32>
    %13 = vector.shape_cast %12 : vector<16xf32> to vector<16x1xf32>
    %14 = vector.broadcast %13 : vector<16x1xf32> to vector<16x128xf32>
    %15 = arith.subf %11, %14 : vector<16x128xf32>
    %16 = math.exp %15 : vector<16x128xf32>
    %cst_9 = arith.constant dense<0.000000e+00> : vector<16xf32>
    %17 = vector.multi_reduction <add>, %16, %cst_9 [1] : vector<16x128xf32> to vector<16xf32>
    %18 = vector.shape_cast %17 : vector<16xf32> to vector<16x1xf32>
    %19 = math.log %18 : vector<16x1xf32>
    %20 = arith.addf %13, %19 : vector<16x1xf32>
    %c0_10 = arith.constant 0 : index
    %c0_11 = arith.constant 0 : index
    %21 = vector.load %arg4[%c0_10, %c0_11] : memref<16x1xi32, #tpu.memory_space<vmem>>, vector<16x1xi32>
    %22 = vector.broadcast %21 : vector<16x1xi32> to vector<16x128xi32>
    %23 = arith.cmpi eq, %7, %22 : vector<16x128xi32>
    %c-100_i32 = arith.constant -100 : i32
    %24 = vector.broadcast %c-100_i32 : i32 to vector<16x1xi32>
    %25 = arith.cmpi ne, %21, %24 : vector<16x1xi32>
    %26 = vector.broadcast %25 : vector<16x1xi1> to vector<16x128xi1>
    %27 = arith.andi %23, %26 : vector<16x128xi1>
    %28 = arith.extui %27 : vector<16x128xi1> to vector<16x128xi32>
    %29 = arith.sitofp %28 : vector<16x128xi32> to vector<16x128xf32>
    %30 = arith.mulf %5, %29 : vector<16x128xf32>
    %cst_12 = arith.constant dense<0.000000e+00> : vector<16xf32>
    %31 = vector.multi_reduction <add>, %30, %cst_12 [1] : vector<16x128xf32> to vector<16xf32>
    %32 = vector.shape_cast %31 : vector<16xf32> to vector<16x1xf32>
    %33 = arith.subf %32, %20 : vector<16x1xf32>
    %34 = math.exp %33 : vector<16x1xf32>
    %cst_13 = arith.constant 1.000000e+00 : f32
    %35 = vector.broadcast %cst_13 : f32 to vector<16x1xf32>
    %36 = arith.subf %35, %34 : vector<16x1xf32>
    %cst_14 = arith.constant 0.000000e+00 : f32
    %37 = vector.broadcast %cst_14 : f32 to vector<16x1xf32>
    %38 = arith.maximumf %36, %37 : vector<16x1xf32>
    %39 = math.sqrt %38 : vector<16x1xf32>
    %40 = arith.mulf %39, %33 : vector<16x1xf32>
    %cst_15 = arith.constant 0.000000e+00 : f32
    %41 = vector.broadcast %cst_15 : f32 to vector<16x1xf32>
    %42 = arith.subf %41, %40 : vector<16x1xf32>
    %43 = vector.broadcast %42 : vector<16x1xf32> to vector<16x128xf32>
    %44 = arith.mulf %43, %29 : vector<16x128xf32>
    %45 = vector.shape_cast %44 : vector<16x128xf32> to vector<2x8x128xf32>
    %cst_16 = arith.constant dense<0.000000e+00> : vector<8x128xf32>
    %46 = vector.multi_reduction <add>, %45, %cst_16 [0] : vector<2x8x128xf32> to vector<8x128xf32>
    %c0_17 = arith.constant 0 : index
    %c0_18 = arith.constant 0 : index
    %47 = vector.load %arg6[%c0_17, %c0_18] : memref<8x128xf32, #tpu.memory_space<vmem>>, vector<8x128xf32>
    tpu.vector_store %arg6[%c0_17, %c0_18], %46 {strides = array<i32>} : memref<8x128xf32, #tpu.memory_space<vmem>>, vector<8x128xf32>,
    return
  }
  func.func @transform_0(%arg0: i32) -> (i32, i32) {
    %c0_i32 = arith.constant 0 : i32
    %c0_i32_0 = arith.constant 0 : i32
    return %arg0, %c0_i32 : i32, i32
  }
  func.func @transform_1(%arg0: i32) -> (i32, i32) {
    %c0_i32 = arith.constant 0 : i32
    %c0_i32_0 = arith.constant 0 : i32
    %c0_i32_1 = arith.constant 0 : i32
    return %c0_i32, %c0_i32_0 : i32, i32
  }
  func.func @transform_2(%arg0: i32) -> (i32, i32) {
    %c0_i32 = arith.constant 0 : i32
    %c0_i32_0 = arith.constant 0 : i32
    %c0_i32_1 = arith.constant 0 : i32
    return %c0_i32, %c0_i32_0 : i32, i32
  }
  func.func @transform_3(%arg0: i32) -> (i32, i32) {
    %c0_i32 = arith.constant 0 : i32
    %c0_i32_0 = arith.constant 0 : i32
    return %arg0, %c0_i32 : i32, i32
  }
  func.func @transform_4(%arg0: i32) -> (i32, i32) {
    %c0_i32 = arith.constant 0 : i32
    %c0_i32_0 = arith.constant 0 : i32
    return %arg0, %c0_i32 : i32, i32
  }
  func.func @transform_5(%arg0: i32) -> (i32, i32) {
    %c0_i32 = arith.constant 0 : i32
    %c0_i32_0 = arith.constant 0 : i32
    return %arg0, %c0_i32 : i32, i32
  }
}

</mosaic_0001>

<bundles_post_ra>
// kernel: tpu_custom_call.1
= control target key start
LH: loop header
LB: loop body
LE: loop exit
PB: predicated region body
PF: predicated region fallthrough
CT: control target
= control target key end

     0   :  { %11 = vsyncpa [#allocation3], 0  ;;  %s460_s0 = inlined_call_operand.hbm [shape: bf16[16,32], index: 0, kind: input, shape index: {}]   ;;  %s461_s1 = inlined_call_operand.vmem [shape: bf16[32,128], index: 1, kind: input, shape index: {}]   ;;  %s462_s2 = inlined_call_operand.vmem [shape: f32[1,128], index: 2, kind: input, shape index: {}]   ;;  %s463_s3 = inlined_call_operand.vmem [shape: s32[16,1], index: 3, kind: input, shape index: {}]   ;;  %s464_s4 = inlined_call_operand.hbm [shape: f32[16,128], index: 4, kind: output, shape index: {0}]   ;;  %s465_s5 = inlined_call_operand.hbm [shape: f32[8,128], index: 5, kind: output, shape index: {1}]  }
   0x1   :  { %12 = vsyncpa [#allocation4], 0 }
   0x2   :  { %13 = vsyncpa [#allocation7], 0  ;;  %s356_s18 = smov [#allocation2]   ;;  %s284_s22 = scalar_lea.hbm %s460_s0, 128 }
   0x3   :  { %s19_s19 = sshll.u32 %s356_s18, 4  ;;  %p285_p0 = scmp.ne.s32.totalorder %s460_s0, %s284_s22  ;;  %s20_s19 = int_to_ptr.vmem [resolvable:$true] %s19_s19 }
   0x4   :  { %p288_p1 = scmp.lt.u32.totalorder %s284_s22, %s460_s0 }
   0x6   :  { %p290_p2 = pnand %p288_p1, %p285_p0 }
   0x8   :  { %293 = shalt.err (!%p290_p2)
}
   0x9   :  { %s294_s27 = scalar_lea.vmem %s20_s19, 128  ;;  %p299_p4 = scmp.lt.s32.totalorder %s20_s19, %s20_s19 }
   0xa   :  { %p295_p3 = scmp.ne.s32.totalorder %s20_s19, %s294_s27  ;;  %p300_p5 = scmp.lt.s32.totalorder %s294_s27, %s294_s27 }
   0xc   :  { %p301_p6 = por %p300_p5, %p299_p4 }
   0xe   :  { %p302_p7 = pnand %p301_p6, %p295_p3 }
  0x10   :  { %305 = shalt.err (!%p302_p7)
}
  0x11   :  { %s357_s28 = smov 64   ;;  %s358_s29 = smov 4  }
  0x12   :  { %25 = dma.hbm_to_vmem [thread:$0]  %s460_s0, 128, %s20_s19, [#allocation3], %s357_s28, %s357_s28, %s358_s29  }
  0x13   :  { %350 = dma.done.wait [#allocation3], 128  }
  0x14   :  { %351 = vsyncadd [#allocation3], 4294967168  ;;  %v359_v0 = vmov 0.0   ;;  %vm360_vm0 = vmmov 0   ;;  %v361_v1 = vmov 0   ;;  %v265_v2 = vld [vmem:[%s461_s1] sm:$0xff]   ;;  %v113_v8 = vlaneseq }
  0x15   :  { %245 = vmatprep.subr.bf16.mxu0 %v359_v0  ;;  %249 = vmatprep.mubr.msk.bf16.mxu0 %vm360_vm0, %v359_v0  ;;  %v266_v3 = vld [vmem:[%s461_s1 + $0x8] sm:$0xff]   ;;  %v138_v4 = vld [vmem:[%s463_s3] sm:$0xff]  ;;  %vm66_vm1 = vcmask 261120  }
  0x16   :  { %263 = vset.pattern.permute.xlu1 %v361_v1  ;;  %264 = vset.pattern.permute.xlu0 %v361_v1  ;;  %v267_v5 = vld [vmem:[#allocation2] sm:$0xff]   ;;  %v139_v6 = vld [vmem:[%s463_s3 + $0x8] sm:$0xff]  ;;  %v114_v9 = vand.u32 127, %v113_v8  ;;  %vm148_vm4 = vcmp.ne.s32.totalorder %v138_v4, 4294967196 }
  0x17   :  { %246 = vmatpush3.bf16.msra.mxu0 %v265_v2  ;;  %141 = vperm.xlu1 %263, %v138_v4   ;;  %vm149_vm2 = vcmp.ne.s32.totalorder %v139_v6, 4294967196  ;;  %v235_v10 = vld [vmem:[%s462_s2] ss:$0 sm:$0xff]  ;;  %v150_v19 = vsel %vm148_vm4, 1, %v361_v1  ;;  %s362_s2 = smov [#allocation5]  }
  0x18   :  { %247 = vmatprep.subr.bf16.mxu0 %v359_v0  ;;  %v151_v7 = vsel %vm149_vm2, 1, %v361_v1  ;;  %vm115_vm3 = vcmp.lt.s32.totalorder %v114_v9, 8  ;;  %s209_s3 = sshll.u32 %s362_s2, 4  ;;  %s210_s3 = int_to_ptr.vmem [resolvable:$true] %s209_s3 }
  0x19   :  { %s306_s15 = scalar_lea.vmem %s210_s3, 256  ;;  %p311_p9 = scmp.lt.s32.totalorder %s210_s3, %s210_s3 }
  0x1a   :  { %p307_p8 = scmp.ne.s32.totalorder %s210_s3, %s306_s15  ;;  %p312_p10 = scmp.lt.s32.totalorder %s306_s15, %s306_s15 }
  0x1b   :  { %248 = vmatpush3.bf16.msra.mxu0 %v266_v3  ;;  %144 = vperm.xlu1 %263, %v139_v6  }
  0x1c   :  { %p313_p11 = por %p312_p10, %p311_p9 }
  0x1e   :  { %250 = vmatmul.mubr.msk.bf16.vlgmr.msra.gmra.mrb[0].mxu0 %vm66_vm1, %v267_v5  ;;  %p314_p12 = pnand %p313_p11, %p307_p8 }
  0x1f   :  { %156 = vperm.xlu1 %263, %v151_v7  }
  0x96   :  { %v142_v20 = vpop.permute.xlu1 %141 }
  0x97   :  { %vm146_vm5 = vcmp.eq.s32.totalorder %v114_v9, %v142_v20 }
  0x9a   :  { %v145_v24 = vpop.permute.xlu1 %144 }
  0x9b   :  { %vm147_vm6 = vcmp.eq.s32.totalorder %v114_v9, %v145_v24 }
  0x9e   :  { %v157_v28 = vpop.permute.xlu1 %156 }
  0x9f   :  { %vm159_vm7 = vcmp.eq.s32.totalorder %v157_v28, 1 }
  0xa0   :  { %vm161_vm10 = vmand %vm147_vm6, %vm159_vm7 }
  0xa1   :  { %v431_v34 = vsel %vm161_vm10, 1.0, %v359_v0 }
  0xf1   :  { %v104_v11 = vpop.f32.mrb[0].mxu0 }
  0xf2   :  { %v105_v12 = vadd.f32 %v235_v10, %v104_v11  ;;  %v251_v13 = vpop.f32.mrb[1].mxu0 }
  0xf3   :  { %v107_v14 = vpop.f32.mrb[2].mxu0 }
  0xf4   :  { %111 = vst [vmem:[#allocation5] sm:$0xff] %v105_v12  ;;  %v108_v15 = vadd.f32 %v235_v10, %v107_v14  ;;  %v252_v16 = vpop.f32.mrb[3].mxu0  ;;  %v116_v17 = vsel %vm115_vm3, %v105_v12, -1e+30 }
  0xf5   :  { %118 = vmax.xlane.f32.xlu0 %v116_v17 }
  0xf6   :  { %112 = vst [vmem:[#allocation5 + $0x8] sm:$0xff] %v108_v15  ;;  %v117_v18 = vsel %vm115_vm3, %v108_v15, -1e+30  ;;  %v167_v35 = vmul.f32 %v431_v34, %v108_v15 }
  0xf9   :  { %120 = vmax.xlane.f32.xlu0 %v117_v18 }
 0x10f   :  { %153 = vperm.xlu0 %264, %v150_v19  }
 0x182   :  { %v119_v21 = vpop.xlane.xlu0 %118 }
 0x183   :  { %v122_v22 = vsub.f32 %v116_v17, %v119_v21 }
 0x185   :  { %v124_v23 = vmul.f32 1.442695, %v122_v22 }
 0x186   :  { %v121_v25 = vpop.xlane.xlu0 %120 }
 0x187   :  { %268 = vpow2.f32 %v124_v23  ;;  %v123_v26 = vsub.f32 %v117_v18, %v121_v25 }
 0x189   :  { %v126_v27 = vmul.f32 1.442695, %v123_v26 }
 0x18b   :  { %270 = vpow2.f32 %v126_v27 }
 0x18e   :  { %v154_v29 = vpop.permute.xlu0 %153 }
 0x18f   :  { %vm158_vm8 = vcmp.eq.s32.totalorder %v154_v29, 1 }
 0x190   :  { %vm160_vm9 = vmand %vm146_vm5, %vm158_vm8 }
 0x191   :  { %v269_v30 = vpop.eup %268  ;;  %v427_v31 = vsel %vm160_vm9, 1.0, %v359_v0 }
 0x192   :  { %128 = vadd.xlane.f32.xlu1 %v269_v30  ;;  %v166_v32 = vmul.f32 %v427_v31, %v105_v12 }
 0x194   :  { %168 = vadd.xlane.f32.xlu0 %v166_v32 }
 0x195   :  { %v271_v33 = vpop.eup %270 }
 0x196   :  { %130 = vadd.xlane.f32.xlu1 %v271_v33 }
 0x19a   :  { %170 = vadd.xlane.f32.xlu1 %v167_v35 }
 0x19b   :  { %317 = shalt.err (!%p314_p12)
}
 0x19c   :  { %s318_s18 = scalar_lea.hbm %s464_s4, 256 }
 0x19d   :  { %p319_p13 = scmp.ne.s32.totalorder %s464_s4, %s318_s18  ;;  %p322_p0 = scmp.lt.u32.totalorder %s318_s18, %s464_s4 }
 0x19f   :  { %p324_p1 = pnand %p322_p0, %p319_p13 }
 0x1a1   :  { %327 = shalt.err (!%p324_p1)
}
 0x1a2   :  { %s363_s23 = smov 128   ;;  %s364_s24 = smov 8  }
 0x1a3   :  { %215 = dma.vmem_to_hbm [thread:$0]  %s210_s3, 256, %s464_s4, [#allocation4], %s363_s23, %s363_s23, %s364_s24  }
 0x1a4   :  { %s365_s4 = smov [#allocation6]  }
 0x1a5   :  { %s222_s27 = sshll.u32 %s365_s4, 4  ;;  %s223_s27 = int_to_ptr.vmem [resolvable:$true] %s222_s27 }
 0x1a6   :  { %s328_s28 = scalar_lea.vmem %s223_s27, 128  ;;  %p333_p3 = scmp.lt.s32.totalorder %s223_s27, %s223_s27 }
 0x1a7   :  { %p329_p2 = scmp.ne.s32.totalorder %s223_s27, %s328_s28  ;;  %p334_p4 = scmp.lt.s32.totalorder %s328_s28, %s328_s28 }
 0x1a9   :  { %p335_p5 = por %p334_p4, %p333_p3 }
 0x1ab   :  { %p336_p6 = pnand %p335_p5, %p329_p2 }
 0x21f   :  { %v129_v36 = vpop.xlane.xlu1 %128 }
 0x220   :  { %272 = vlog2.f32 %v129_v36 }
 0x221   :  { %v169_v42 = vpop.xlane.xlu0 %168 }
 0x223   :  { %v131_v37 = vpop.xlane.xlu1 %130 }
 0x224   :  { %274 = vlog2.f32 %v131_v37 }
 0x227   :  { %v171_v47 = vpop.xlane.xlu1 %170 }
 0x22a   :  { %v273_v38 = vpop.eup %272 }
 0x22b   :  { %v133_v39 = vmul.f32 0.6931472, %v273_v38 }
 0x22d   :  { %v136_v40 = vadd.f32 %v133_v39, %v119_v21 }
 0x22e   :  { %v275_v41 = vpop.eup %274 }
 0x22f   :  { %v172_v43 = vsub.f32 %v169_v42, %v136_v40  ;;  %v135_v44 = vmul.f32 0.6931472, %v275_v41 }
 0x231   :  { %v174_v45 = vmul.f32 1.442695, %v172_v43  ;;  %v137_v46 = vadd.f32 %v135_v44, %v121_v25 }
 0x233   :  { %276 = vpow2.f32 %v174_v45  ;;  %v173_v48 = vsub.f32 %v171_v47, %v137_v46 }
 0x235   :  { %v176_v49 = vmul.f32 1.442695, %v173_v48 }
 0x237   :  { %278 = vpow2.f32 %v176_v49 }
 0x23d   :  { %v277_v50 = vpop.eup %276 }
 0x23e   :  { %v178_v51 = vsub.f32 1.0, %v277_v50 }
 0x240   :  { %v180_v52 = vmax.f32 %v178_v51, 0.0 }
 0x241   :  { %v279_v53 = vpop.eup %278 }
 0x242   :  { %280 = vrsqrt.f32 %v180_v52  ;;  %v179_v54 = vsub.f32 1.0, %v279_v53  ;;  %vm184_vm11 = vcmp.eq.f32.partialorder %v180_v52, inf  ;;  %v187_v58 = vand.u32 2147483648, %v180_v52 }
 0x243   :  { %vm186_vm12 = vcmp.eq.f32.partialorder %v180_v52, 0.0 }
 0x244   :  { %v181_v55 = vmax.f32 %v179_v54, 0.0 }
 0x246   :  { %282 = vrsqrt.f32 %v181_v55  ;;  %vm191_vm13 = vcmp.eq.f32.partialorder %v181_v55, inf  ;;  %v194_v0 = vand.u32 2147483648, %v181_v55  ;;  %vm193_vm14 = vcmp.eq.f32.partialorder %v181_v55, 0.0 }
 0x24c   :  { %v281_v56 = vpop.eup %280 }
 0x24d   :  { %v183_v57 = vmul.f32 %v281_v56, %v180_v52 }
 0x24f   :  { %v185_v59 = vsel %vm184_vm11, %v180_v52, %v183_v57 }
 0x250   :  { %v188_v60 = vsel %vm186_vm12, %v187_v58, %v185_v59  ;;  %v283_v61 = vpop.eup %282 }
 0x251   :  { %v196_v62 = vmul.f32 %v188_v60, %v172_v43  ;;  %v190_v63 = vmul.f32 %v283_v61, %v181_v55 }
 0x253   :  { %v192_v1 = vsel %vm191_vm13, %v181_v55, %v190_v63  ;;  %v198_v3 = vsub.f32 0.0, %v196_v62 }
 0x254   :  { %v195_v2 = vsel %vm193_vm14, %v194_v0, %v192_v1 }
 0x255   :  { %v197_v4 = vmul.f32 %v195_v2, %v173_v48  ;;  %v200_v6 = vmul.f32 %v427_v31, %v198_v3 }
 0x257   :  { %v199_v5 = vsub.f32 0.0, %v197_v4 }
 0x259   :  { %v201_v7 = vmul.f32 %v431_v34, %v199_v5 }
 0x25b   :  { %v202_v8 = vadd.f32 %v201_v7, %v200_v6 }
 0x25d   :  { %203 = vst [vmem:[#allocation6] sm:$0xff] %v202_v8 }
 0x25e   :  { %339 = shalt.err (!%p336_p6)
}
 0x25f   :  { %s340_s6 = scalar_lea.hbm %s465_s5, 128 }
 0x260   :  { %p341_p7 = scmp.ne.s32.totalorder %s465_s5, %s340_s6  ;;  %p344_p8 = scmp.lt.u32.totalorder %s340_s6, %s465_s5 }
 0x262   :  { %p346_p9 = pnand %p344_p8, %p341_p7 }
 0x264   :  { %349 = shalt.err (!%p346_p9)
}
 0x265   :  { %225 = dma.vmem_to_hbm [thread:$0]  %s223_s27, 128, %s465_s5, [#allocation7]  }
 0x266   :  { %352 = dma.done.wait [#allocation4], 256  }
 0x267   :  { %353 = vsyncadd [#allocation4], 4294967040 }
 0x268   :  { %354 = dma.done.wait [#allocation7], 128  }
 0x269   :  { %355 = vsyncadd [#allocation7], 4294967168 }
 0x26a   :  { %232 = vsyncpa [#allocation3], 1 }
 0x26b   :  { %233 = vsyncpa [#allocation4], 1 }
 0x26c   :  { %234 = vsyncpa [#allocation7], 1 }

// kernel: tpu_custom_call.1
= control target key start
LH: loop header
LB: loop body
LE: loop exit
PB: predicated region body
PF: predicated region fallthrough
CT: control target
= control target key end

     0   :  { %11 = vsyncpa [#allocation3], 0  ;;  %s460_s0 = inlined_call_operand.hbm [shape: bf16[16,32], index: 0, kind: input, shape index: {}]   ;;  %s461_s1 = inlined_call_operand.vmem [shape: bf16[32,128], index: 1, kind: input, shape index: {}]   ;;  %s462_s2 = inlined_call_operand.vmem [shape: f32[1,128], index: 2, kind: input, shape index: {}]   ;;  %s463_s3 = inlined_call_operand.vmem [shape: s32[16,1], index: 3, kind: input, shape index: {}]   ;;  %s464_s4 = inlined_call_operand.hbm [shape: f32[16,128], index: 4, kind: output, shape index: {0}]   ;;  %s465_s5 = inlined_call_operand.hbm [shape: f32[8,128], index: 5, kind: output, shape index: {1}]  }
   0x1   :  { %12 = vsyncpa [#allocation4], 0 }
   0x2   :  { %13 = vsyncpa [#allocation7], 0  ;;  %s356_s18 = smov [#allocation2]   ;;  %s284_s22 = scalar_lea.hbm %s460_s0, 128 }
   0x3   :  { %s19_s19 = sshll.u32 %s356_s18, 4  ;;  %p285_p0 = scmp.ne.s32.totalorder %s460_s0, %s284_s22  ;;  %s20_s19 = int_to_ptr.vmem [resolvable:$true] %s19_s19 }
   0x4   :  { %p288_p1 = scmp.lt.u32.totalorder %s284_s22, %s460_s0 }
   0x6   :  { %p290_p2 = pnand %p288_p1, %p285_p0 }
   0x8   :  { %293 = shalt.err (!%p290_p2)
}
   0x9   :  { %s294_s27 = scalar_lea.vmem %s20_s19, 128  ;;  %p299_p4 = scmp.lt.s32.totalorder %s20_s19, %s20_s19 }
   0xa   :  { %p295_p3 = scmp.ne.s32.totalorder %s20_s19, %s294_s27  ;;  %p300_p5 = scmp.lt.s32.totalorder %s294_s27, %s294_s27 }
   0xc   :  { %p301_p6 = por %p300_p5, %p299_p4 }
   0xe   :  { %p302_p7 = pnand %p301_p6, %p295_p3 }
  0x10   :  { %305 = shalt.err (!%p302_p7)
}
  0x11   :  { %s357_s28 = smov 64   ;;  %s358_s29 = smov 4  }
  0x12   :  { %25 = dma.hbm_to_vmem [thread:$0]  %s460_s0, 128, %s20_s19, [#allocation3], %s357_s28, %s357_s28, %s358_s29  }
  0x13   :  { %350 = dma.done.wait [#allocation3], 128  }
  0x14   :  { %351 = vsyncadd [#allocation3], 4294967168  ;;  %v359_v0 = vmov 0.0   ;;  %vm360_vm0 = vmmov 0   ;;  %v361_v1 = vmov 0   ;;  %v265_v2 = vld [vmem:[%s461_s1] sm:$0xff]   ;;  %v113_v8 = vlaneseq }
  0x15   :  { %245 = vmatprep.subr.bf16.mxu0 %v359_v0  ;;  %249 = vmatprep.mubr.msk.bf16.mxu0 %vm360_vm0, %v359_v0  ;;  %v266_v3 = vld [vmem:[%s461_s1 + $0x8] sm:$0xff]   ;;  %v138_v4 = vld [vmem:[%s463_s3] sm:$0xff]  ;;  %vm66_vm1 = vcmask 261120  }
  0x16   :  { %263 = vset.pattern.permute.xlu1 %v361_v1  ;;  %264 = vset.pattern.permute.xlu0 %v361_v1  ;;  %v267_v5 = vld [vmem:[#allocation2] sm:$0xff]   ;;  %v139_v6 = vld [vmem:[%s463_s3 + $0x8] sm:$0xff]  ;;  %v114_v9 = vand.u32 127, %v113_v8  ;;  %vm148_vm4 = vcmp.ne.s32.totalorder %v138_v4, 4294967196 }
  0x17   :  { %246 = vmatpush3.bf16.msra.mxu0 %v265_v2  ;;  %141 = vperm.xlu1 %263, %v138_v4   ;;  %vm149_vm2 = vcmp.ne.s32.totalorder %v139_v6, 4294967196  ;;  %v235_v10 = vld [vmem:[%s462_s2] ss:$0 sm:$0xff]  ;;  %v150_v19 = vsel %vm148_vm4, 1, %v361_v1  ;;  %s362_s2 = smov [#allocation5]  }
  0x18   :  { %247 = vmatprep.subr.bf16.mxu0 %v359_v0  ;;  %v151_v7 = vsel %vm149_vm2, 1, %v361_v1  ;;  %vm115_vm3 = vcmp.lt.s32.totalorder %v114_v9, 8  ;;  %s209_s3 = sshll.u32 %s362_s2, 4  ;;  %s210_s3 = int_to_ptr.vmem [resolvable:$true] %s209_s3 }
  0x19   :  { %s306_s15 = scalar_lea.vmem %s210_s3, 256  ;;  %p311_p9 = scmp.lt.s32.totalorder %s210_s3, %s210_s3 }
  0x1a   :  { %p307_p8 = scmp.ne.s32.totalorder %s210_s3, %s306_s15  ;;  %p312_p10 = scmp.lt.s32.totalorder %s306_s15, %s306_s15 }
  0x1b   :  { %248 = vmatpush3.bf16.msra.mxu0 %v266_v3  ;;  %144 = vperm.xlu1 %263, %v139_v6  }
  0x1c   :  { %p313_p11 = por %p312_p10, %p311_p9 }
  0x1e   :  { %250 = vmatmul.mubr.msk.bf16.vlgmr.msra.gmra.mrb[0].mxu0 %vm66_vm1, %v267_v5  ;;  %p314_p12 = pnand %p313_p11, %p307_p8 }
  0x1f   :  { %156 = vperm.xlu1 %263, %v151_v7  }
  0x96   :  { %v142_v20 = vpop.permute.xlu1 %141 }
  0x97   :  { %vm146_vm5 = vcmp.eq.s32.totalorder %v114_v9, %v142_v20 }
  0x9a   :  { %v145_v24 = vpop.permute.xlu1 %144 }
  0x9b   :  { %vm147_vm6 = vcmp.eq.s32.totalorder %v114_v9, %v145_v24 }
  0x9e   :  { %v157_v28 = vpop.permute.xlu1 %156 }
  0x9f   :  { %vm159_vm7 = vcmp.eq.s32.totalorder %v157_v28, 1 }
  0xa0   :  { %vm161_vm10 = vmand %vm147_vm6, %vm159_vm7 }
  0xa1   :  { %v431_v34 = vsel %vm161_vm10, 1.0, %v359_v0 }
  0xf1   :  { %v104_v11 = vpop.f32.mrb[0].mxu0 }
  0xf2   :  { %v105_v12 = vadd.f32 %v235_v10, %v104_v11  ;;  %v251_v13 = vpop.f32.mrb[1].mxu0 }
  0xf3   :  { %v107_v14 = vpop.f32.mrb[2].mxu0 }
  0xf4   :  { %111 = vst [vmem:[#allocation5] sm:$0xff] %v105_v12  ;;  %v108_v15 = vadd.f32 %v235_v10, %v107_v14  ;;  %v252_v16 = vpop.f32.mrb[3].mxu0  ;;  %v116_v17 = vsel %vm115_vm3, %v105_v12, -1e+30 }
  0xf5   :  { %118 = vmax.xlane.f32.xlu0 %v116_v17 }
  0xf6   :  { %112 = vst [vmem:[#allocation5 + $0x8] sm:$0xff] %v108_v15  ;;  %v117_v18 = vsel %vm115_vm3, %v108_v15, -1e+30  ;;  %v167_v35 = vmul.f32 %v431_v34, %v108_v15 }
  0xf9   :  { %120 = vmax.xlane.f32.xlu0 %v117_v18 }
 0x10f   :  { %153 = vperm.xlu0 %264, %v150_v19  }
 0x182   :  { %v119_v21 = vpop.xlane.xlu0 %118 }
 0x183   :  { %v122_v22 = vsub.f32 %v116_v17, %v119_v21 }
 0x185   :  { %v124_v23 = vmul.f32 1.442695, %v122_v22 }
 0x186   :  { %v121_v25 = vpop.xlane.xlu0 %120 }
 0x187   :  { %268 = vpow2.f32 %v124_v23  ;;  %v123_v26 = vsub.f32 %v117_v18, %v121_v25 }
 0x189   :  { %v126_v27 = vmul.f32 1.442695, %v123_v26 }
 0x18b   :  { %270 = vpow2.f32 %v126_v27 }
 0x18e   :  { %v154_v29 = vpop.permute.xlu0 %153 }
 0x18f   :  { %vm158_vm8 = vcmp.eq.s32.totalorder %v154_v29, 1 }
 0x190   :  { %vm160_vm9 = vmand %vm146_vm5, %vm158_vm8 }
 0x191   :  { %v269_v30 = vpop.eup %268  ;;  %v427_v31 = vsel %vm160_vm9, 1.0, %v359_v0 }
 0x192   :  { %128 = vadd.xlane.f32.xlu1 %v269_v30  ;;  %v166_v32 = vmul.f32 %v427_v31, %v105_v12 }
 0x194   :  { %168 = vadd.xlane.f32.xlu0 %v166_v32 }
 0x195   :  { %v271_v33 = vpop.eup %270 }
 0x196   :  { %130 = vadd.xlane.f32.xlu1 %v271_v33 }
 0x19a   :  { %170 = vadd.xlane.f32.xlu1 %v167_v35 }
 0x19b   :  { %317 = shalt.err (!%p314_p12)
}
 0x19c   :  { %s318_s18 = scalar_lea.hbm %s464_s4, 256 }
 0x19d   :  { %p319_p13 = scmp.ne.s32.totalorder %s464_s4, %s318_s18  ;;  %p322_p0 = scmp.lt.u32.totalorder %s318_s18, %s464_s4 }
 0x19f   :  { %p324_p1 = pnand %p322_p0, %p319_p13 }
 0x1a1   :  { %327 = shalt.err (!%p324_p1)
}
 0x1a2   :  { %s363_s23 = smov 128   ;;  %s364_s24 = smov 8  }
 0x1a3   :  { %215 = dma.vmem_to_hbm [thread:$0]  %s210_s3, 256, %s464_s4, [#allocation4], %s363_s23, %s363_s23, %s364_s24  }
 0x1a4   :  { %s365_s4 = smov [#allocation6]  }
 0x1a5   :  { %s222_s27 = sshll.u32 %s365_s4, 4  ;;  %s223_s27 = int_to_ptr.vmem [resolvable:$true] %s222_s27 }
 0x1a6   :  { %s328_s28 = scalar_lea.vmem %s223_s27, 128  ;;  %p333_p3 = scmp.lt.s32.totalorder %s223_s27, %s223_s27 }
 0x1a7   :  { %p329_p2 = scmp.ne.s32.totalorder %s223_s27, %s328_s28  ;;  %p334_p4 = scmp.lt.s32.totalorder %s328_s28, %s328_s28 }
 0x1a9   :  { %p335_p5 = por %p334_p4, %p333_p3 }
 0x1ab   :  { %p336_p6 = pnand %p335_p5, %p329_p2 }
 0x21f   :  { %v129_v36 = vpop.xlane.xlu1 %128 }
 0x220   :  { %272 = vlog2.f32 %v129_v36 }
 0x221   :  { %v169_v42 = vpop.xlane.xlu0 %168 }
 0x223   :  { %v131_v37 = vpop.xlane.xlu1 %130 }
 0x224   :  { %274 = vlog2.f32 %v131_v37 }
 0x227   :  { %v171_v47 = vpop.xlane.xlu1 %170 }
 0x22a   :  { %v273_v38 = vpop.eup %272 }
 0x22b   :  { %v133_v39 = vmul.f32 0.6931472, %v273_v38 }
 0x22d   :  { %v136_v40 = vadd.f32 %v133_v39, %v119_v21 }
 0x22e   :  { %v275_v41 = vpop.eup %274 }
 0x22f   :  { %v172_v43 = vsub.f32 %v169_v42, %v136_v40  ;;  %v135_v44 = vmul.f32 0.6931472, %v275_v41 }
 0x231   :  { %v174_v45 = vmul.f32 1.442695, %v172_v43  ;;  %v137_v46 = vadd.f32 %v135_v44, %v121_v25 }
 0x233   :  { %276 = vpow2.f32 %v174_v45  ;;  %v173_v48 = vsub.f32 %v171_v47, %v137_v46 }
 0x235   :  { %v176_v49 = vmul.f32 1.442695, %v173_v48 }
 0x237   :  { %278 = vpow2.f32 %v176_v49 }
 0x23d   :  { %v277_v50 = vpop.eup %276 }
 0x23e   :  { %v178_v51 = vsub.f32 1.0, %v277_v50 }
 0x240   :  { %v180_v52 = vmax.f32 %v178_v51, 0.0 }
 0x241   :  { %v279_v53 = vpop.eup %278 }
 0x242   :  { %280 = vrsqrt.f32 %v180_v52  ;;  %v179_v54 = vsub.f32 1.0, %v279_v53  ;;  %vm184_vm11 = vcmp.eq.f32.partialorder %v180_v52, inf  ;;  %v187_v58 = vand.u32 2147483648, %v180_v52 }
 0x243   :  { %vm186_vm12 = vcmp.eq.f32.partialorder %v180_v52, 0.0 }
 0x244   :  { %v181_v55 = vmax.f32 %v179_v54, 0.0 }
 0x246   :  { %282 = vrsqrt.f32 %v181_v55  ;;  %vm191_vm13 = vcmp.eq.f32.partialorder %v181_v55, inf  ;;  %v194_v0 = vand.u32 2147483648, %v181_v55  ;;  %vm193_vm14 = vcmp.eq.f32.partialorder %v181_v55, 0.0 }
 0x24c   :  { %v281_v56 = vpop.eup %280 }
 0x24d   :  { %v183_v57 = vmul.f32 %v281_v56, %v180_v52 }
 0x24f   :  { %v185_v59 = vsel %vm184_vm11, %v180_v52, %v183_v57 }
 0x250   :  { %v188_v60 = vsel %vm186_vm12, %v187_v58, %v185_v59  ;;  %v283_v61 = vpop.eup %282 }
 0x251   :  { %v196_v62 = vmul.f32 %v188_v60, %v172_v43  ;;  %v190_v63 = vmul.f32 %v283_v61, %v181_v55 }
 0x253   :  { %v192_v1 = vsel %vm191_vm13, %v181_v55, %v190_v63  ;;  %v198_v3 = vsub.f32 0.0, %v196_v62 }
 0x254   :  { %v195_v2 = vsel %vm193_vm14, %v194_v0, %v192_v1 }
 0x255   :  { %v197_v4 = vmul.f32 %v195_v2, %v173_v48  ;;  %v200_v6 = vmul.f32 %v427_v31, %v198_v3 }
 0x257   :  { %v199_v5 = vsub.f32 0.0, %v197_v4 }
 0x259   :  { %v201_v7 = vmul.f32 %v431_v34, %v199_v5 }
 0x25b   :  { %v202_v8 = vadd.f32 %v201_v7, %v200_v6 }
 0x25d   :  { %203 = vst [vmem:[#allocation6] sm:$0xff] %v202_v8 }
 0x25e   :  { %339 = shalt.err (!%p336_p6)
}
 0x25f   :  { %s340_s6 = scalar_lea.hbm %s465_s5, 128 }
 0x260   :  { %p341_p7 = scmp.ne.s32.totalorder %s465_s5, %s340_s6  ;;  %p344_p8 = scmp.lt.u32.totalorder %s340_s6, %s465_s5 }
 0x262   :  { %p346_p9 = pnand %p344_p8, %p341_p7 }
 0x264   :  { %349 = shalt.err (!%p346_p9)
}
 0x265   :  { %225 = dma.vmem_to_hbm [thread:$0]  %s223_s27, 128, %s465_s5, [#allocation7]  }
 0x266   :  { %352 = dma.done.wait [#allocation4], 256  }
 0x267   :  { %353 = vsyncadd [#allocation4], 4294967040 }
 0x268   :  { %354 = dma.done.wait [#allocation7], 128  }
 0x269   :  { %355 = vsyncadd [#allocation7], 4294967168 }
 0x26a   :  { %232 = vsyncpa [#allocation3], 1 }
 0x26b   :  { %233 = vsyncpa [#allocation4], 1 }
 0x26c   :  { %234 = vsyncpa [#allocation7], 1 }

</bundles_post_ra>
